<compile_context>
chip_gen: v5e
topology: v5e:2x2
jax: 0.10.0
libtpu: 0.0.40
codegen_flags: <defaults>
</compile_context>

<pallas_src>
import functools

import jax
import jax.numpy as jnp
from jax.experimental import pallas as pl
from jax.experimental.pallas import tpu as pltpu


LOG_STD_MIN = -20.0
LOG_STD_MAX = 2.0

_LANE = 128     # TPU lane width
_SUBLANE = 8    # f32 sublane tile


def _roundup(x, m):
    return ((x + m - 1) // m) * m


def policy_forward_kernel(
    state_ref,   # (TB, S)       f32
    w1_ref,      # (S, H)        weight dtype (bf16 by default)
    w2_ref,      # (H, H)        weight dtype
    wh_ref,      # (H, HEAD_W)   weight dtype, [Wm | Ws | 0-pad], HEAD_W % 128 == 0
    b_ref,       # (3, BW)       f32, row0 = b1, row1 = b2, row2 = [bm | bs | 0-pad]
    out_ref,     # (TB, HEAD_W)  f32, [mean | log_std | 0-pad]
    *,
    hidden_dim: int,
    action_dim: int,
    head_width: int,
):
    H, A = hidden_dim, action_dim
    wdt = w1_ref.dtype

    x = state_ref[...]
    # Row-indexed, offset-0 lane slices: lane-aligned regardless of H.
    b1 = b_ref[0:1, 0:H]
    b2 = b_ref[1:2, 0:H]
    bh = b_ref[2:3, 0:head_width]

    # linear1 + relu  (bf16 x bf16 -> f32 MXU accumulation, f32 epilogue)
    h = jnp.dot(x.astype(wdt), w1_ref[...], preferred_element_type=jnp.float32) + b1
    h = jnp.maximum(h, 0.0)

    # linear2 + relu
    h = jnp.dot(h.astype(wdt), w2_ref[...], preferred_element_type=jnp.float32) + b2
    h = jnp.maximum(h, 0.0)

    # fused, lane-padded heads: one matmul producing [mean | log_std | zeros]
    heads = jnp.dot(h.astype(wdt), wh_ref[...], preferred_element_type=jnp.float32) + bh

    # Clamp only the log_std lanes (>= A) via a lane mask — no cross-lane moves.
    # Padded lanes (>= 2A) are exactly 0 (zero weights + zero bias); clip(0) = 0.
    lane = jax.lax.broadcasted_iota(jnp.int32, heads.shape, dimension=1)
    clipped = jnp.clip(heads, LOG_STD_MIN, LOG_STD_MAX)
    out_ref[...] = jnp.where(lane >= A, clipped, heads).astype(out_ref.dtype)


def _choose_batch_tiling(batch, batch_tile):
    """Pick (tile_rows, grid_steps) for the batch axis.

    * At least 2 grid steps once there is enough work to split so the
      "parallel" axis shards across both TensorCores on v7x (on single-TC
      v5e/v6e the extra step is ~0.35 us — noise).
    * When tiled, the tile must be a multiple of 8 (f32 sublane tile); the
      ragged final block is handled by Pallas partial-block semantics, so no
      wrapper-side jnp.pad / extra HBM pass is needed.
    """
    min_steps = 2 if batch >= 4 * _SUBLANE else 1
    n_steps = max(min_steps, pl.cdiv(batch, batch_tile))
    if n_steps == 1:
        return batch, 1                       # single full-extent block: any B is legal
    tb = _roundup(pl.cdiv(batch, n_steps), _SUBLANE)
    return tb, pl.cdiv(batch, tb)


def policy_forward(state, packed, *, action_dim, batch_tile=512):
    """state: (B, state_dim) f32.  packed: dict from pack_params().

    Weights stay resident in VMEM across grid steps (constant block index).
    NOTE: when B is not a multiple of the batch tile, the trailing block reads
    undefined rows (Pallas partial-block semantics); those rows are never
    written back to the (B, HEAD_W) output, so results are unaffected.
    """
    B, S = state.shape
    H = packed["w1"].shape[1]
    A = action_dim
    head_w = packed["w_heads"].shape[1]
    bw = packed["biases"].shape[1]

    TB, n_steps = _choose_batch_tiling(B, batch_tile)

    kernel = functools.partial(
        policy_forward_kernel, hidden_dim=H, action_dim=A, head_width=head_w
    )

    # Raise the scoped-VMEM limit only if the (default double-buffered) resident
    # footprint would exceed the 32 MiB default — matters for large H on v7x.
    wbytes = jnp.dtype(packed["w1"].dtype).itemsize
    vmem_need = (
        2 * 4 * (TB * S + TB * head_w + 3 * bw)
        + 2 * wbytes * (S * H + H * H + H * head_w)
        + (4 << 20)  # headroom for casts / internal scratch
    )
    vmem_limit = None if vmem_need <= (32 << 20) else int(min(vmem_need, 64 << 20))

    out = pl.pallas_call(
        kernel,
        grid=(n_steps,),
        in_specs=[
            pl.BlockSpec((TB, S), lambda i: (i, 0)),         # state: tiled over batch
            pl.BlockSpec((S, H), lambda i: (0, 0)),          # w1: resident
            pl.BlockSpec((H, H), lambda i: (0, 0)),          # w2: resident
            pl.BlockSpec((H, head_w), lambda i: (0, 0)),     # fused head weights: resident
            pl.BlockSpec((3, bw), lambda i: (0, 0)),         # packed biases: resident
        ],
        out_specs=pl.BlockSpec((TB, head_w), lambda i: (i, 0)),
        out_shape=jax.ShapeDtypeStruct((B, head_w), jnp.float32),
        compiler_params=pltpu.CompilerParams(
            dimension_semantics=("parallel",),               # megacore over batch on v7x
            vmem_limit_bytes=vmem_limit,
        ),
    )(state, packed["w1"], packed["w2"], packed["w_heads"], packed["biases"])

    return out[:, :A], out[:, A : 2 * A]


def init_params(key, state_dim, action_dim, hidden_dim):
    """Deterministic Xavier-uniform init (matches Networks.weights_init_ convention),
    stored as (in, out) for the kernel's x @ W + b layout."""
    def xavier(k, fan_in, fan_out):
        limit = jnp.sqrt(6.0 / (fan_in + fan_out))
        return jax.random.uniform(k, (fan_in, fan_out), jnp.float32, -limit, limit)

    k1, k2, k3, k4 = jax.random.split(key, 4)
    return {
        "w1": xavier(k1, state_dim, hidden_dim),
        "b1": jnp.zeros((hidden_dim,), jnp.float32),
        "w2": xavier(k2, hidden_dim, hidden_dim),
        "b2": jnp.zeros((hidden_dim,), jnp.float32),
        "wm": xavier(k3, hidden_dim, action_dim),
        "bm": jnp.zeros((action_dim,), jnp.float32),
        "ws": xavier(k4, hidden_dim, action_dim),
        "bs": jnp.zeros((action_dim,), jnp.float32),
    }


def pack_params(p, *, weight_dtype=jnp.bfloat16):
    """One-time packing:
      * heads fused + padded to a full 128-lane slab: W_heads (H, HEAD_W)
        with mean in lanes 0..A-1, log_std in lanes A..2A-1, zeros after;
      * biases packed one-per-row (lane-aligned): (3, BW) f32;
      * weights cast to `weight_dtype` (bf16 by default)."""
    S, H = p["w1"].shape
    A = p["wm"].shape[1]
    head_w = max(_LANE, _roundup(2 * A, _LANE))
    bw = max(H, head_w)

    w_heads = (
        jnp.zeros((H, head_w), jnp.float32)
        .at[:, :A].set(p["wm"])
        .at[:, A : 2 * A].set(p["ws"])
    )
    biases = (
        jnp.zeros((3, bw), jnp.float32)
        .at[0, :H].set(p["b1"])
        .at[1, :H].set(p["b2"])
        .at[2, :A].set(p["bm"])
        .at[2, A : 2 * A].set(p["bs"])
    )
    return {
        "w1": p["w1"].astype(weight_dtype),
        "w2": p["w2"].astype(weight_dtype),
        "w_heads": w_heads.astype(weight_dtype),
        "biases": biases,
    }


def policy_forward_ref(state, p, *, weight_dtype=jnp.float32):
    """Pure-JAX reference (unpacked params).
    weight_dtype=f32   -> exact PyTorch-module math.
    weight_dtype=bf16  -> mimics the kernel's precision (bf16 operands, f32 accum)."""
    def dot(x, w):
        if weight_dtype == jnp.float32:
            return jnp.dot(x, w, preferred_element_type=jnp.float32)
        return jnp.dot(x.astype(weight_dtype), w.astype(weight_dtype),
                       preferred_element_type=jnp.float32)

    h = jnp.maximum(dot(state, p["w1"]) + p["b1"], 0.0)
    h = jnp.maximum(dot(h, p["w2"]) + p["b2"], 0.0)
    mean = dot(h, p["wm"]) + p["bm"]
    log_std = jnp.clip(dot(h, p["ws"]) + p["bs"], LOG_STD_MIN, LOG_STD_MAX)
    return mean, log_std


# TODO(synk): Policy.sample() (Normal.rsample / tanh / log_prob correction) is not part
# of forward(); it is intentionally not implemented here.

if __name__ == "__main__":
    # Small shapes consistent with the module's forward.
    batch, state_dim, action_dim, hidden_dim = 8, 16, 8, 32

    key = jax.random.PRNGKey(0)
    k_params, k_state = jax.random.split(key)

    params = init_params(k_params, state_dim, action_dim, hidden_dim)
    packed = pack_params(params)                      # bf16 weights by default
    state = jax.random.normal(k_state, (batch, state_dim), jnp.float32)

    fwd = jax.jit(policy_forward, static_argnames=("action_dim", "batch_tile"))
    mean, log_std = fwd(state, packed, action_dim=action_dim)
    jax.block_until_ready((mean, log_std))

    # Reference at the kernel's precision (bf16 weights/activations, f32 accumulation).
    mean_q, log_std_q = policy_forward_ref(state, params, weight_dtype=jnp.bfloat16)
    # Pure-f32 reference == the original module's math (loose check only).
    mean_f, log_std_f = policy_forward_ref(state, params)

    assert mean.shape == (batch, action_dim)
    assert log_std.shape == (batch, action_dim)
    assert jnp.allclose(mean, mean_q, atol=2e-3, rtol=2e-3)
    assert jnp.allclose(log_std, log_std_q, atol=2e-3, rtol=2e-3)
    assert jnp.allclose(mean, mean_f, atol=5e-2, rtol=5e-2)
    assert jnp.allclose(log_std, log_std_f, atol=5e-2, rtol=5e-2)
    assert jnp.all(log_std >= LOG_STD_MIN) and jnp.all(log_std <= LOG_STD_MAX)

    # Multi-step grid path: B=600 -> 2 grid steps of 304 rows; ragged tail handled by
    # Pallas partial-block semantics (no wrapper-side jnp.pad, no dead-row writeback).
    big_b = 600
    big_state = jax.random.normal(jax.random.PRNGKey(1), (big_b, state_dim), jnp.float32)
    bmean, blog_std = fwd(big_state, packed, action_dim=action_dim)
    jax.block_until_ready((bmean, blog_std))
    bmean_q, blog_std_q = policy_forward_ref(big_state, params, weight_dtype=jnp.bfloat16)
    assert bmean.shape == (big_b, action_dim) and blog_std.shape == (big_b, action_dim)
    assert jnp.allclose(bmean, bmean_q, atol=2e-3, rtol=2e-3)
    assert jnp.allclose(blog_std, blog_std_q, atol=2e-3, rtol=2e-3)

    print("KERNEL_OK")
</pallas_src>

<mosaic_0001>
module attributes {stable_mosaic.version = 11 : i64} {
  func.func @policy_forward_kernel(%arg0: i32, %arg1: memref<8x16xf32, #tpu.memory_space<vmem>>, %arg2: memref<16x32xbf16, #tpu.memory_space<vmem>>, %arg3: memref<32x32xbf16, #tpu.memory_space<vmem>>, %arg4: memref<32x128xbf16, #tpu.memory_space<vmem>>, %arg5: memref<3x128xf32, #tpu.memory_space<vmem>>, %arg6: memref<8x128xf32, #tpu.memory_space<vmem>>) attributes {dimension_semantics = [#tpu.dimension_semantics<parallel>], iteration_bounds = array<i64: 1>, scalar_prefetch = 0 : i64, scratch_operands = 0 : i64, tpu.core_type = #tpu.core_type<tc>, window_params = [{transform_indices = @transform_0, window_bounds = array<i64: 8, 16>}, {pipeline_mode = #tpu.pipeline_mode<synchronous>, transform_indices = @transform_1, window_bounds = array<i64: 16, 32>}, {pipeline_mode = #tpu.pipeline_mode<synchronous>, transform_indices = @transform_2, window_bounds = array<i64: 32, 32>}, {pipeline_mode = #tpu.pipeline_mode<synchronous>, transform_indices = @transform_3, window_bounds = array<i64: 32, 128>}, {pipeline_mode = #tpu.pipeline_mode<synchronous>, transform_indices = @transform_4, window_bounds = array<i64: 3, 128>}, {transform_indices = @transform_5, window_bounds = array<i64: 8, 128>}]} {
    %c0 = arith.constant 0 : index
    %c0_0 = arith.constant 0 : index
    %0 = vector.load %arg1[%c0, %c0_0] : memref<8x16xf32, #tpu.memory_space<vmem>>, vector<8x16xf32>
    %c0_1 = arith.constant 0 : index
    %c0_2 = arith.constant 0 : index
    %1 = vector.load %arg5[%c0_1, %c0_2] : memref<3x128xf32, #tpu.memory_space<vmem>>, vector<1x32xf32>
    %c1 = arith.constant 1 : index
    %c0_3 = arith.constant 0 : index
    %2 = vector.load %arg5[%c1, %c0_3] : memref<3x128xf32, #tpu.memory_space<vmem>>, vector<1x32xf32>
    %c2 = arith.constant 2 : index
    %c0_4 = arith.constant 0 : index
    %3 = vector.load %arg5[%c2, %c0_4] : memref<3x128xf32, #tpu.memory_space<vmem>>, vector<1x128xf32>
    %4 = arith.truncf %0 : vector<8x16xf32> to vector<8x16xbf16>
    %c0_5 = arith.constant 0 : index
    %c0_6 = arith.constant 0 : index
    %5 = vector.load %arg2[%c0_5, %c0_6] : memref<16x32xbf16, #tpu.memory_space<vmem>>, vector<16x32xbf16>
    %cst = arith.constant dense<0.000000e+00> : vector<8x32xf32>
    %6 = tpu.matmul %4, %5, %cst {dimension_numbers = #tpu.dot_dimension_numbers<[1], [0], [0], [1], [0, 0, 1, 1], [], []>} : vector<8x16xbf16>, vector<16x32xbf16>, vector<8x32xf32> -> vector<8x32xf32>
    %7 = vector.broadcast %1 : vector<1x32xf32> to vector<8x32xf32>
    %8 = arith.addf %6, %7 : vector<8x32xf32>
    %cst_7 = arith.constant 0.000000e+00 : f32
    %9 = vector.broadcast %cst_7 : f32 to vector<8x32xf32>
    %10 = arith.maximumf %8, %9 : vector<8x32xf32>
    %11 = arith.truncf %10 : vector<8x32xf32> to vector<8x32xbf16>
    %c0_8 = arith.constant 0 : index
    %c0_9 = arith.constant 0 : index
    %12 = vector.load %arg3[%c0_8, %c0_9] : memref<32x32xbf16, #tpu.memory_space<vmem>>, vector<32x32xbf16>
    %cst_10 = arith.constant dense<0.000000e+00> : vector<8x32xf32>
    %13 = tpu.matmul %11, %12, %cst_10 {dimension_numbers = #tpu.dot_dimension_numbers<[1], [0], [0], [1], [0, 0, 1, 1], [], []>} : vector<8x32xbf16>, vector<32x32xbf16>, vector<8x32xf32> -> vector<8x32xf32>
    %14 = vector.broadcast %2 : vector<1x32xf32> to vector<8x32xf32>
    %15 = arith.addf %13, %14 : vector<8x32xf32>
    %cst_11 = arith.constant 0.000000e+00 : f32
    %16 = vector.broadcast %cst_11 : f32 to vector<8x32xf32>
    %17 = arith.maximumf %15, %16 : vector<8x32xf32>
    %18 = arith.truncf %17 : vector<8x32xf32> to vector<8x32xbf16>
    %c0_12 = arith.constant 0 : index
    %c0_13 = arith.constant 0 : index
    %19 = vector.load %arg4[%c0_12, %c0_13] : memref<32x128xbf16, #tpu.memory_space<vmem>>, vector<32x128xbf16>
    %cst_14 = arith.constant dense<0.000000e+00> : vector<8x128xf32>
    %20 = tpu.matmul %18, %19, %cst_14 {dimension_numbers = #tpu.dot_dimension_numbers<[1], [0], [0], [1], [0, 0, 1, 1], [], []>} : vector<8x32xbf16>, vector<32x128xbf16>, vector<8x128xf32> -> vector<8x128xf32>
    %21 = vector.broadcast %3 : vector<1x128xf32> to vector<8x128xf32>
    %22 = arith.addf %20, %21 : vector<8x128xf32>
    %23 = tpu.iota {dimensions = array<i32: 1>} : vector<8x128xi32>
    %cst_15 = arith.constant -2.000000e+01 : f32
    %cst_16 = arith.constant 2.000000e+00 : f32
    %24 = vector.broadcast %cst_15 : f32 to vector<8x128xf32>
    %25 = arith.maximumf %24, %22 : vector<8x128xf32>
    %26 = vector.broadcast %cst_16 : f32 to vector<8x128xf32>
    %27 = arith.minimumf %26, %25 : vector<8x128xf32>
    %c8_i32 = arith.constant 8 : i32
    %28 = vector.broadcast %c8_i32 : i32 to vector<8x128xi32>
    %29 = arith.cmpi sge, %23, %28 : vector<8x128xi32>
    %30 = arith.select %29, %27, %22 : vector<8x128xi1>, vector<8x128xf32>
    %c0_17 = arith.constant 0 : index
    %c0_18 = arith.constant 0 : index
    %31 = vector.load %arg6[%c0_17, %c0_18] : memref<8x128xf32, #tpu.memory_space<vmem>>, vector<8x128xf32>
    tpu.vector_store %arg6[%c0_17, %c0_18], %30 {strides = array<i32>} : memref<8x128xf32, #tpu.memory_space<vmem>>, vector<8x128xf32>,
    return
  }
  func.func @transform_0(%arg0: i32) -> (i32, i32) {
    %c0_i32 = arith.constant 0 : i32
    %c0_i32_0 = arith.constant 0 : i32
    return %arg0, %c0_i32 : i32, i32
  }
  func.func @transform_1(%arg0: i32) -> (i32, i32) {
    %c0_i32 = arith.constant 0 : i32
    %c0_i32_0 = arith.constant 0 : i32
    %c0_i32_1 = arith.constant 0 : i32
    return %c0_i32, %c0_i32_0 : i32, i32
  }
  func.func @transform_2(%arg0: i32) -> (i32, i32) {
    %c0_i32 = arith.constant 0 : i32
    %c0_i32_0 = arith.constant 0 : i32
    %c0_i32_1 = arith.constant 0 : i32
    return %c0_i32, %c0_i32_0 : i32, i32
  }
  func.func @transform_3(%arg0: i32) -> (i32, i32) {
    %c0_i32 = arith.constant 0 : i32
    %c0_i32_0 = arith.constant 0 : i32
    %c0_i32_1 = arith.constant 0 : i32
    return %c0_i32, %c0_i32_0 : i32, i32
  }
  func.func @transform_4(%arg0: i32) -> (i32, i32) {
    %c0_i32 = arith.constant 0 : i32
    %c0_i32_0 = arith.constant 0 : i32
    %c0_i32_1 = arith.constant 0 : i32
    return %c0_i32, %c0_i32_0 : i32, i32
  }
  func.func @transform_5(%arg0: i32) -> (i32, i32) {
    %c0_i32 = arith.constant 0 : i32
    %c0_i32_0 = arith.constant 0 : i32
    return %arg0, %c0_i32 : i32, i32
  }
}

</mosaic_0001>

<bundles_post_ra>
// kernel: policy_forward.1
= control target key start
LH: loop header
LB: loop body
LE: loop exit
PB: predicated region body
PF: predicated region fallthrough
CT: control target
= control target key end

     0   :  { %10 = vsyncpa [#allocation3], 0  ;;  %s430_s0 = inlined_call_operand.hbm [shape: f32[8,16], index: 0, kind: input, shape index: {}]   ;;  %s431_s1 = inlined_call_operand.hbm [shape: bf16[16,32], index: 1, kind: input, shape index: {}]   ;;  %s432_s2 = inlined_call_operand.hbm [shape: bf16[32,32], index: 2, kind: input, shape index: {}]   ;;  %s433_s3 = inlined_call_operand.hbm [shape: bf16[32,128], index: 3, kind: input, shape index: {}]   ;;  %s434_s4 = inlined_call_operand.hbm [shape: f32[3,128], index: 4, kind: input, shape index: {}]   ;;  %s435_s5 = inlined_call_operand.vmem [shape: f32[8,128], index: 5, kind: output, shape index: {}]  }
   0x1   :  { %11 = vsyncpa [#allocation5], 0  ;;  %s28_s20 = sshll.u32 %s431_s1, 4  ;;  %s29_s20 = int_to_ptr.hbm [resolvable:$true] %s28_s20 }
   0x2   :  { %12 = vsyncpa [#allocation8], 0  ;;  %s375_s21 = smov [#allocation4]   ;;  %s54_s25 = sshll.u32 %s433_s3, 4  ;;  %s55_s25 = int_to_ptr.hbm [resolvable:$true] %s54_s25 }
   0x3   :  { %s30_s22 = sshll.u32 %s375_s21, 4  ;;  %s376_s26 = smov 64   ;;  %s31_s22 = int_to_ptr.vmem [resolvable:$true] %s30_s22 }
   0x4   :  { %s377_s27 = smov 4   ;;  %s378_s28 = smov [#allocation7]  }
   0x5   :  { %36 = dma.hbm_to_vmem [thread:$0]  %s29_s20, 128, %s31_s22, [#allocation5], %s376_s26, %s376_s26, %s377_s27  }
   0x6   :  { %s56_s29 = sshll.u32 %s378_s28, 4  ;;  %s18_s7 = sshll.u32 %s430_s0, 4  ;;  %s57_s29 = int_to_ptr.vmem [resolvable:$true] %s56_s29  ;;  %s19_s7 = int_to_ptr.hbm [resolvable:$true] %s18_s7 }
   0x7   :  { %62 = dma.hbm_to_vmem [thread:$0]  %s55_s25, 256, %s57_s29, [#allocation8], %s376_s26, %s376_s26, %s377_s27  }
   0x8   :  { %s41_s9 = sshll.u32 %s432_s2, 4  ;;  %s379_s10 = smov [#allocation2]   ;;  %s42_s9 = int_to_ptr.hbm [resolvable:$true] %s41_s9 }
   0x9   :  { %s20_s11 = sshll.u32 %s379_s10, 4  ;;  %s380_s3 = smov [#allocation6]   ;;  %s21_s11 = int_to_ptr.vmem [resolvable:$true] %s20_s11 }
   0xa   :  { %23 = dma.hbm_to_vmem [thread:$0]  %s19_s7, 128, %s21_s11, [#allocation3]  }
   0xb   :  { %s43_s12 = sshll.u32 %s380_s3, 4  ;;  %s68_s15 = sshll.u32 %s434_s4, 4  ;;  %s44_s12 = int_to_ptr.vmem [resolvable:$true] %s43_s12  ;;  %s69_s15 = int_to_ptr.hbm [resolvable:$true] %s68_s15 }
   0xc   :  { %49 = dma.hbm_to_vmem [thread:$0]  %s42_s9, 256, %s44_s12, [#allocation5], %s376_s26, %s376_s26, %s377_s27  }
   0xd   :  { %s381_s0 = smov [#allocation9]  }
   0xe   :  { %s70_s16 = sshll.u32 %s381_s0, 4  ;;  %s71_s16 = int_to_ptr.vmem [resolvable:$true] %s70_s16 }
   0xf   :  { %73 = dma.hbm_to_vmem [thread:$0]  %s69_s15, 64, %s71_s16, [#allocation8]  }
  0x10   :  { %369 = dma.done.wait [#allocation3], 128  }
  0x11   :  { %370 = vsyncadd [#allocation3], 4294967168 }
  0x12   :  { %371 = dma.done.wait [#allocation5], 384  }
  0x13   :  { %372 = vsyncadd [#allocation5], 4294966912 }
  0x14   :  { %373 = dma.done.wait [#allocation8], 320  }
  0x15   :  { %374 = vsyncadd [#allocation8], 4294966976  ;;  %v234_v0 = vld [vmem:[#allocation4] sm:$0xff]  ;;  %v95_v1 = vld [vmem:[#allocation2] sm:$0xff]  ;;  %vm109_vm0 = vcmask 130048   ;;  %vm145_vm1 = vcmask 261120   ;;  %v197_v19 = vlaneseq }
  0x16   :  { %v99_v2 = vpack.c.bf16 %v95_v1, %v95_v1  ;;  %120 = vmatpush.bf16.msra.mxu0 %v234_v0  ;;  %v236_v3 = vld [vmem:[#allocation6 + $0x8] sm:$0xff]  ;;  %v235_v4 = vld [vmem:[#allocation6] sm:$0xff]  ;;  %v238_v11 = vld [vmem:[#allocation7 + $0x8] sm:$0xff] }
  0x17   :  { %155 = vmatpush.bf16.msra.mxu1 %v236_v3  ;;  %v246_v5 = vld [vmem:[#allocation9] ss:$0 sm:$0xff]  ;;  %190 = vmatpush.bf16.msra.mxu2 %v238_v11  ;;  %v237_v12 = vld [vmem:[#allocation7] sm:$0xff]  ;;  %v247_v13 = vld [vmem:[#allocation9 + $0x1] ss:$0 sm:$0xff]  ;;  %v198_v22 = vand.u32 127, %v197_v19 }
  0x18   :  { %v248_v20 = vld [vmem:[#allocation9 + $0x2] ss:$0 sm:$0xff] }
  0x19   :  { %215 = vmatmul.msk.bf16.vlgmr.msra.gmra.mxu0 %vm109_vm0, %v99_v2  ;;  %vm201_vm2 = vcmp.ge.s32.totalorder %v198_v22, 8 }
  0x1b   :  { %156 = vmatpush.bf16.msra.mxu1 %v235_v4  ;;  %191 = vmatpush.bf16.msra.mxu2 %v237_v12 }
  0x96   :  { %v122_v6 = vpop.f32.mrf.mxu0 }
  0x97   :  { %v123_v7 = vadd.f32 %v246_v5, %v122_v6 }
  0x99   :  { %v126_v8 = vmax.f32 %v123_v7, 0.0 }
  0x9b   :  { %v127_v9 = vpack.c.bf16 %v126_v8, %v126_v8 }
  0x9d   :  { %224 = vmatmul.msk.bf16.vlgmr.msra.gmra.mxu1 %vm145_vm1, %v127_v9 }
  0x9e   :  { %v124_v10 = vpop.f32.mrf.mxu0 }
 0x11a   :  { %v158_v14 = vpop.f32.mrf.mxu1 }
 0x11b   :  { %v159_v15 = vadd.f32 %v247_v13, %v158_v14 }
 0x11d   :  { %v162_v16 = vmax.f32 %v159_v15, 0.0 }
 0x11f   :  { %v163_v17 = vpack.c.bf16 %v162_v16, %v162_v16 }
 0x121   :  { %233 = vmatmul.msk.bf16.vlgmr.msra.gmra.mxu2 %vm145_vm1, %v163_v17 }
 0x122   :  { %v160_v18 = vpop.f32.mrf.mxu1 }
 0x1a4   :  { %v193_v21 = vpop.f32.mrf.mxu2 }
 0x1a5   :  { %v194_v23 = vadd.f32 %v248_v20, %v193_v21 }
 0x1a7   :  { %v199_v24 = vmax.f32 %v194_v23, -20.0 }
 0x1a9   :  { %v200_v25 = vmin.f32 %v199_v24, 2.0 }
 0x1ab   :  { %v202_v26 = vsel %vm201_vm2, %v200_v25, %v194_v23 }
 0x1ac   :  { %203 = vst [vmem:[%s435_s5] sm:$0xff] %v202_v26  ;;  %v195_v27 = vpop.f32.mrf.mxu2 }
 0x1ad   :  { %208 = vsyncpa [#allocation3], 1 }
 0x1ae   :  { %209 = vsyncpa [#allocation5], 1 }
 0x1af   :  { %210 = vsyncpa [#allocation8], 1 }

</bundles_post_ra>
